<compile_context>
chip_gen: v7x
topology: tpu7x:2x2x1
jax: 0.10.0
libtpu: 0.0.40
codegen_flags: <defaults>
</compile_context>

<pallas_src>
import jax
import jax.numpy as jnp
from jax import lax
from jax.experimental import pallas as pl
from jax.experimental.pallas import tpu as pltpu

# ---- problem sizes (small, consistent with the module's forward) ----
B = 2          # batch
S = 8          # seq_len
E = 32         # embed_dim
H = 4          # num_heads
DH = E // H    # head_dim
F = 64         # ff_dim
LN_EPS = 1e-5
LANES = 128    # TPU lane width; 3E=96 and F=64 are zero-padded to this
BS = B * S


def _layer_norm(h, g, b):
    mu = jnp.mean(h, axis=-1, keepdims=True)
    var = jnp.mean((h - mu) ** 2, axis=-1, keepdims=True)
    return (h - mu) * lax.rsqrt(var + LN_EPS) * g + b


def _encoder_layer_kernel(x_ref, wa_ref, wb_ref, vec_ref, o_ref):
    # x_ref  : (B*S, E)        activations, flattened batch*seq
    # wa_ref : (2E, 128)       rows 0:E  = [wq|wk|wv|0],  rows E:2E = [w1|0]
    # wb_ref : (E+128, E)      rows 0:E  = wo,            rows E:   = [w2 ; 0]
    # vec_ref: (8, 128)        packed bias / LayerNorm table (see pack_params)
    x = x_ref[...]                                   # (BS, E), f32

    wqkv = wa_ref[0:E, :]                            # (E, 128)
    w1p = wa_ref[E:2 * E, :]                         # (E, 128)
    wo = wb_ref[0:E, :]                              # (E, E)
    w2p = wb_ref[E:E + LANES, :]                     # (128, E)

    b_qkv = vec_ref[0:1, :]                          # (1, 128)
    bo = vec_ref[1:2, 0:E]                           # (1, E)
    b1 = vec_ref[2:3, :]                             # (1, 128)  (cols >= F are zero)
    b2 = vec_ref[3:4, 0:E]
    g1 = vec_ref[4:5, 0:E]
    be1 = vec_ref[5:6, 0:E]
    g2 = vec_ref[6:7, 0:E]
    be2 = vec_ref[7:8, 0:E]

    # ---- fused QKV projection: one lane-dense (BS, 128) matmul on the MXU ----
    qkv = jnp.dot(x, wqkv, preferred_element_type=jnp.float32) + b_qkv   # (BS, 128)

    # ---- multi-head self-attention ----
    # Static per-(batch, head) loop over tiny (S, DH) tiles.  The output
    # projection is folded into the loop (per-head sublane slice of wo,
    # accumulated), which removes the lane-axis concat of head outputs.
    scale = 1.0 / (DH ** 0.5)
    attn_rows = []
    for b in range(B):
        r0 = b * S
        acc = None
        for h in range(H):
            c0 = h * DH
            qh = qkv[r0:r0 + S, c0:c0 + DH]                      # (S, DH)
            kh = qkv[r0:r0 + S, E + c0:E + c0 + DH]              # (S, DH)
            vh = qkv[r0:r0 + S, 2 * E + c0:2 * E + c0 + DH]      # (S, DH)
            sc = lax.dot_general(qh, kh, (((1,), (1,)), ((), ())),
                                 preferred_element_type=jnp.float32) * scale  # (S, S)
            sc = sc - jnp.max(sc, axis=-1, keepdims=True)
            p = jnp.exp(sc)
            p = p * pl.reciprocal(jnp.sum(p, axis=-1, keepdims=True), approx=True)
            ctx_h = jnp.dot(p, vh, preferred_element_type=jnp.float32)         # (S, DH)
            contrib = jnp.dot(ctx_h, wo[c0:c0 + DH, :],
                              preferred_element_type=jnp.float32)              # (S, E)
            acc = contrib if acc is None else acc + contrib
        attn_rows.append(acc)
    attn = jnp.concatenate(attn_rows, axis=0) + bo               # (BS, E)  (sublane concat)

    # ---- residual + LayerNorm1 ----
    h1 = _layer_norm(x + attn, g1, be1)

    # ---- position-wise feed-forward (hidden dim padded to 128 lanes; exact) ----
    f = jnp.dot(h1, w1p, preferred_element_type=jnp.float32) + b1        # (BS, 128)
    f = jnp.maximum(f, 0.0)                                              # relu
    f = jnp.dot(f, w2p, preferred_element_type=jnp.float32) + b2         # (BS, E)

    # ---- residual + LayerNorm2 ----
    out = _layer_norm(h1 + f, g2, be2)
    o_ref[...] = out.astype(o_ref.dtype)


def transformer_encoder_layer(x, packed):
    """x: (B, S, E) float32. packed: dict from pack_params()."""
    b_, s_, e_ = x.shape
    x2 = x.reshape(b_ * s_, e_)
    vmem = pl.BlockSpec(memory_space=pltpu.MemorySpace.VMEM)   # whole array in VMEM, single step
    out2 = pl.pallas_call(
        _encoder_layer_kernel,
        out_shape=jax.ShapeDtypeStruct((b_ * s_, e_), x.dtype),
        in_specs=[vmem, vmem, vmem, vmem],
        out_specs=vmem,
    )(x2, packed["wa"], packed["wb"], packed["vec"])
    return out2.reshape(b_, s_, e_)


def init_params(key):
    ks = jax.random.split(key, 6)
    std = 0.02
    return {
        "wq": std * jax.random.normal(ks[0], (E, E), jnp.float32),
        "wk": std * jax.random.normal(ks[1], (E, E), jnp.float32),
        "wv": std * jax.random.normal(ks[2], (E, E), jnp.float32),
        "wo": std * jax.random.normal(ks[3], (E, E), jnp.float32),
        "w1": std * jax.random.normal(ks[4], (E, F), jnp.float32),
        "w2": std * jax.random.normal(ks[5], (F, E), jnp.float32),
        "bq": 0.01 * jnp.ones((1, E), jnp.float32),
        "bk": -0.01 * jnp.ones((1, E), jnp.float32),
        "bv": 0.02 * jnp.ones((1, E), jnp.float32),
        "bo": jnp.zeros((1, E), jnp.float32),
        "b1": 0.01 * jnp.ones((1, F), jnp.float32),
        "b2": jnp.zeros((1, E), jnp.float32),
        "g1": jnp.ones((1, E), jnp.float32),
        "be1": jnp.zeros((1, E), jnp.float32),
        "g2": jnp.ones((1, E), jnp.float32),
        "be2": jnp.zeros((1, E), jnp.float32),
    }


def pack_params(p):
    """Pack the 16 logical weight/bias tensors into 3 kernel inputs (one-time prep)."""
    e3 = 3 * E
    wqkv = jnp.concatenate([p["wq"], p["wk"], p["wv"]], axis=1)      # (E, 96)
    wqkv = jnp.pad(wqkv, ((0, 0), (0, LANES - e3)))                  # (E, 128)
    w1p = jnp.pad(p["w1"], ((0, 0), (0, LANES - F)))                 # (E, 128)
    wa = jnp.concatenate([wqkv, w1p], axis=0)                        # (2E, 128)

    w2p = jnp.pad(p["w2"], ((0, LANES - F), (0, 0)))                 # (128, E)
    wb = jnp.concatenate([p["wo"], w2p], axis=0)                     # (E+128, E)

    def row(v):
        return jnp.pad(v, ((0, 0), (0, LANES - v.shape[1])))         # (1, 128)

    bqkv = jnp.concatenate([p["bq"], p["bk"], p["bv"]], axis=1)      # (1, 96)
    vec = jnp.concatenate([
        row(bqkv), row(p["bo"]), row(p["b1"]), row(p["b2"]),
        row(p["g1"]), row(p["be1"]), row(p["g2"]), row(p["be2"]),
    ], axis=0)                                                       # (8, 128)
    return {"wa": wa, "wb": wb, "vec": vec}


def reference_forward(x, p):
    """Pure-JAX reference with identical semantics (for correctness check)."""
    def layer_norm(h, g, b):
        mu = jnp.mean(h, axis=-1, keepdims=True)
        var = jnp.mean((h - mu) ** 2, axis=-1, keepdims=True)
        return (h - mu) * jax.lax.rsqrt(var + LN_EPS) * g + b

    q = x @ p["wq"] + p["bq"]
    k = x @ p["wk"] + p["bk"]
    v = x @ p["wv"] + p["bv"]
    q = q.reshape(B, S, H, DH).transpose(0, 2, 1, 3)
    k = k.reshape(B, S, H, DH).transpose(0, 2, 1, 3)
    v = v.reshape(B, S, H, DH).transpose(0, 2, 1, 3)
    sc = jnp.einsum("bhqd,bhkd->bhqk", q, k) / (DH ** 0.5)
    pr = jax.nn.softmax(sc, axis=-1)
    ctx = jnp.einsum("bhqk,bhkd->bhqd", pr, v)
    ctx = ctx.transpose(0, 2, 1, 3).reshape(B, S, E)
    attn = ctx @ p["wo"] + p["bo"]

    h1 = layer_norm(x + attn, p["g1"], p["be1"])
    f = jnp.maximum(h1 @ p["w1"] + p["b1"], 0.0) @ p["w2"] + p["b2"]
    return layer_norm(h1 + f, p["g2"], p["be2"])


if __name__ == "__main__":
    key = jax.random.PRNGKey(0)
    kx, kp = jax.random.split(key)
    x = jax.random.normal(kx, (B, S, E), jnp.float32)
    params = init_params(kp)
    packed = pack_params(params)

    out = transformer_encoder_layer(x, packed)
    out = jax.block_until_ready(out)

    ref = reference_forward(x, params)
    assert out.shape == (B, S, E), out.shape
    err = jnp.max(jnp.abs(out - ref))
    # Tolerance slightly above f32 roundoff to cover the approximate (EUP)
    # reciprocal in the softmax normalisation; since the attention output is
    # small relative to the residual, the resulting error is ~1e-5.
    assert jnp.allclose(out, ref, atol=2e-4, rtol=2e-4), f"max abs err {err}"
    print("KERNEL_OK")
</pallas_src>

<mosaic_0001>
module attributes {stable_mosaic.version = 11 : i64} {
  func.func @_encoder_layer_kernel(%arg0: memref<16x32xf32, #tpu.memory_space<vmem>>, %arg1: memref<64x128xf32, #tpu.memory_space<vmem>>, %arg2: memref<160x32xf32, #tpu.memory_space<vmem>>, %arg3: memref<8x128xf32, #tpu.memory_space<vmem>>, %arg4: memref<16x32xf32, #tpu.memory_space<vmem>>) attributes {dimension_semantics = [], scalar_prefetch = 0 : i64, scratch_operands = 0 : i64, tpu.core_type = #tpu.core_type<tc>} {
    %c0 = arith.constant 0 : index
    %c0_0 = arith.constant 0 : index
    %0 = vector.load %arg0[%c0, %c0_0] : memref<16x32xf32, #tpu.memory_space<vmem>>, vector<16x32xf32>
    %c0_1 = arith.constant 0 : index
    %c0_2 = arith.constant 0 : index
    %1 = vector.load %arg1[%c0_1, %c0_2] : memref<64x128xf32, #tpu.memory_space<vmem>>, vector<32x128xf32>
    %c32 = arith.constant 32 : index
    %c0_3 = arith.constant 0 : index
    %2 = vector.load %arg1[%c32, %c0_3] : memref<64x128xf32, #tpu.memory_space<vmem>>, vector<32x128xf32>
    %c0_4 = arith.constant 0 : index
    %c0_5 = arith.constant 0 : index
    %3 = vector.load %arg2[%c0_4, %c0_5] : memref<160x32xf32, #tpu.memory_space<vmem>>, vector<32x32xf32>
    %c32_6 = arith.constant 32 : index
    %c0_7 = arith.constant 0 : index
    %4 = vector.load %arg2[%c32_6, %c0_7] : memref<160x32xf32, #tpu.memory_space<vmem>>, vector<128x32xf32>
    %c0_8 = arith.constant 0 : index
    %c0_9 = arith.constant 0 : index
    %5 = vector.load %arg3[%c0_8, %c0_9] : memref<8x128xf32, #tpu.memory_space<vmem>>, vector<1x128xf32>
    %c1 = arith.constant 1 : index
    %c0_10 = arith.constant 0 : index
    %6 = vector.load %arg3[%c1, %c0_10] : memref<8x128xf32, #tpu.memory_space<vmem>>, vector<1x32xf32>
    %c2 = arith.constant 2 : index
    %c0_11 = arith.constant 0 : index
    %7 = vector.load %arg3[%c2, %c0_11] : memref<8x128xf32, #tpu.memory_space<vmem>>, vector<1x128xf32>
    %c3 = arith.constant 3 : index
    %c0_12 = arith.constant 0 : index
    %8 = vector.load %arg3[%c3, %c0_12] : memref<8x128xf32, #tpu.memory_space<vmem>>, vector<1x32xf32>
    %c4 = arith.constant 4 : index
    %c0_13 = arith.constant 0 : index
    %9 = vector.load %arg3[%c4, %c0_13] : memref<8x128xf32, #tpu.memory_space<vmem>>, vector<1x32xf32>
    %c5 = arith.constant 5 : index
    %c0_14 = arith.constant 0 : index
    %10 = vector.load %arg3[%c5, %c0_14] : memref<8x128xf32, #tpu.memory_space<vmem>>, vector<1x32xf32>
    %c6 = arith.constant 6 : index
    %c0_15 = arith.constant 0 : index
    %11 = vector.load %arg3[%c6, %c0_15] : memref<8x128xf32, #tpu.memory_space<vmem>>, vector<1x32xf32>
    %c7 = arith.constant 7 : index
    %c0_16 = arith.constant 0 : index
    %12 = vector.load %arg3[%c7, %c0_16] : memref<8x128xf32, #tpu.memory_space<vmem>>, vector<1x32xf32>
    %cst = arith.constant dense<0.000000e+00> : vector<16x128xf32>
    %13 = tpu.matmul %0, %1, %cst {dimension_numbers = #tpu.dot_dimension_numbers<[1], [0], [0], [1], [0, 0, 1, 1], [], []>} : vector<16x32xf32>, vector<32x128xf32>, vector<16x128xf32> -> vector<16x128xf32>
    %14 = vector.broadcast %5 : vector<1x128xf32> to vector<16x128xf32>
    %15 = arith.addf %13, %14 : vector<16x128xf32>
    %16 = vector.extract_strided_slice %15 {offsets = [0, 0], sizes = [8, 8], strides = [1, 1]} : vector<16x128xf32> to vector<8x8xf32>
    %17 = vector.extract_strided_slice %15 {offsets = [0, 32], sizes = [8, 8], strides = [1, 1]} : vector<16x128xf32> to vector<8x8xf32>
    %18 = vector.extract_strided_slice %15 {offsets = [0, 64], sizes = [8, 8], strides = [1, 1]} : vector<16x128xf32> to vector<8x8xf32>
    %cst_17 = arith.constant dense<0.000000e+00> : vector<8x8xf32>
    %19 = tpu.matmul %16, %17, %cst_17 {dimension_numbers = #tpu.dot_dimension_numbers<[1], [1], [0], [0], [0, 0, 1, 0], [], []>} : vector<8x8xf32>, vector<8x8xf32>, vector<8x8xf32> -> vector<8x8xf32>
    %cst_18 = arith.constant 0.353553385 : f32
    %20 = vector.broadcast %cst_18 : f32 to vector<8x8xf32>
    %21 = arith.mulf %19, %20 : vector<8x8xf32>
    %cst_19 = arith.constant dense<0xFF800000> : vector<8xf32>
    %22 = vector.multi_reduction <maximumf>, %21, %cst_19 [1] : vector<8x8xf32> to vector<8xf32>
    %23 = vector.shape_cast %22 : vector<8xf32> to vector<8x1xf32>
    %24 = vector.broadcast %23 : vector<8x1xf32> to vector<8x8xf32>
    %25 = arith.subf %21, %24 : vector<8x8xf32>
    %26 = math.exp %25 : vector<8x8xf32>
    %cst_20 = arith.constant dense<0.000000e+00> : vector<8xf32>
    %27 = vector.multi_reduction <add>, %26, %cst_20 [1] : vector<8x8xf32> to vector<8xf32>
    %28 = vector.shape_cast %27 : vector<8xf32> to vector<8x1xf32>
    %29 = tpu.reciprocal %28 {approx = true} : vector<8x1xf32> -> vector<8x1xf32>
    %30 = vector.broadcast %29 : vector<8x1xf32> to vector<8x8xf32>
    %31 = arith.mulf %26, %30 : vector<8x8xf32>
    %cst_21 = arith.constant dense<0.000000e+00> : vector<8x8xf32>
    %32 = tpu.matmul %31, %18, %cst_21 {dimension_numbers = #tpu.dot_dimension_numbers<[1], [0], [0], [1], [0, 0, 1, 1], [], []>} : vector<8x8xf32>, vector<8x8xf32>, vector<8x8xf32> -> vector<8x8xf32>
    %33 = vector.extract_strided_slice %3 {offsets = [0, 0], sizes = [8, 32], strides = [1, 1]} : vector<32x32xf32> to vector<8x32xf32>
    %cst_22 = arith.constant dense<0.000000e+00> : vector<8x32xf32>
    %34 = tpu.matmul %32, %33, %cst_22 {dimension_numbers = #tpu.dot_dimension_numbers<[1], [0], [0], [1], [0, 0, 1, 1], [], []>} : vector<8x8xf32>, vector<8x32xf32>, vector<8x32xf32> -> vector<8x32xf32>
    %35 = vector.extract_strided_slice %15 {offsets = [0, 8], sizes = [8, 8], strides = [1, 1]} : vector<16x128xf32> to vector<8x8xf32>
    %36 = vector.extract_strided_slice %15 {offsets = [0, 40], sizes = [8, 8], strides = [1, 1]} : vector<16x128xf32> to vector<8x8xf32>
    %37 = vector.extract_strided_slice %15 {offsets = [0, 72], sizes = [8, 8], strides = [1, 1]} : vector<16x128xf32> to vector<8x8xf32>
    %cst_23 = arith.constant dense<0.000000e+00> : vector<8x8xf32>
    %38 = tpu.matmul %35, %36, %cst_23 {dimension_numbers = #tpu.dot_dimension_numbers<[1], [1], [0], [0], [0, 0, 1, 0], [], []>} : vector<8x8xf32>, vector<8x8xf32>, vector<8x8xf32> -> vector<8x8xf32>
    %cst_24 = arith.constant 0.353553385 : f32
    %39 = vector.broadcast %cst_24 : f32 to vector<8x8xf32>
    %40 = arith.mulf %38, %39 : vector<8x8xf32>
    %cst_25 = arith.constant dense<0xFF800000> : vector<8xf32>
    %41 = vector.multi_reduction <maximumf>, %40, %cst_25 [1] : vector<8x8xf32> to vector<8xf32>
    %42 = vector.shape_cast %41 : vector<8xf32> to vector<8x1xf32>
    %43 = vector.broadcast %42 : vector<8x1xf32> to vector<8x8xf32>
    %44 = arith.subf %40, %43 : vector<8x8xf32>
    %45 = math.exp %44 : vector<8x8xf32>
    %cst_26 = arith.constant dense<0.000000e+00> : vector<8xf32>
    %46 = vector.multi_reduction <add>, %45, %cst_26 [1] : vector<8x8xf32> to vector<8xf32>
    %47 = vector.shape_cast %46 : vector<8xf32> to vector<8x1xf32>
    %48 = tpu.reciprocal %47 {approx = true} : vector<8x1xf32> -> vector<8x1xf32>
    %49 = vector.broadcast %48 : vector<8x1xf32> to vector<8x8xf32>
    %50 = arith.mulf %45, %49 : vector<8x8xf32>
    %cst_27 = arith.constant dense<0.000000e+00> : vector<8x8xf32>
    %51 = tpu.matmul %50, %37, %cst_27 {dimension_numbers = #tpu.dot_dimension_numbers<[1], [0], [0], [1], [0, 0, 1, 1], [], []>} : vector<8x8xf32>, vector<8x8xf32>, vector<8x8xf32> -> vector<8x8xf32>
    %52 = vector.extract_strided_slice %3 {offsets = [8, 0], sizes = [8, 32], strides = [1, 1]} : vector<32x32xf32> to vector<8x32xf32>
    %cst_28 = arith.constant dense<0.000000e+00> : vector<8x32xf32>
    %53 = tpu.matmul %51, %52, %cst_28 {dimension_numbers = #tpu.dot_dimension_numbers<[1], [0], [0], [1], [0, 0, 1, 1], [], []>} : vector<8x8xf32>, vector<8x32xf32>, vector<8x32xf32> -> vector<8x32xf32>
    %54 = arith.addf %34, %53 : vector<8x32xf32>
    %55 = vector.extract_strided_slice %15 {offsets = [0, 16], sizes = [8, 8], strides = [1, 1]} : vector<16x128xf32> to vector<8x8xf32>
    %56 = vector.extract_strided_slice %15 {offsets = [0, 48], sizes = [8, 8], strides = [1, 1]} : vector<16x128xf32> to vector<8x8xf32>
    %57 = vector.extract_strided_slice %15 {offsets = [0, 80], sizes = [8, 8], strides = [1, 1]} : vector<16x128xf32> to vector<8x8xf32>
    %cst_29 = arith.constant dense<0.000000e+00> : vector<8x8xf32>
    %58 = tpu.matmul %55, %56, %cst_29 {dimension_numbers = #tpu.dot_dimension_numbers<[1], [1], [0], [0], [0, 0, 1, 0], [], []>} : vector<8x8xf32>, vector<8x8xf32>, vector<8x8xf32> -> vector<8x8xf32>
    %cst_30 = arith.constant 0.353553385 : f32
    %59 = vector.broadcast %cst_30 : f32 to vector<8x8xf32>
    %60 = arith.mulf %58, %59 : vector<8x8xf32>
    %cst_31 = arith.constant dense<0xFF800000> : vector<8xf32>
    %61 = vector.multi_reduction <maximumf>, %60, %cst_31 [1] : vector<8x8xf32> to vector<8xf32>
    %62 = vector.shape_cast %61 : vector<8xf32> to vector<8x1xf32>
    %63 = vector.broadcast %62 : vector<8x1xf32> to vector<8x8xf32>
    %64 = arith.subf %60, %63 : vector<8x8xf32>
    %65 = math.exp %64 : vector<8x8xf32>
    %cst_32 = arith.constant dense<0.000000e+00> : vector<8xf32>
    %66 = vector.multi_reduction <add>, %65, %cst_32 [1] : vector<8x8xf32> to vector<8xf32>
    %67 = vector.shape_cast %66 : vector<8xf32> to vector<8x1xf32>
    %68 = tpu.reciprocal %67 {approx = true} : vector<8x1xf32> -> vector<8x1xf32>
    %69 = vector.broadcast %68 : vector<8x1xf32> to vector<8x8xf32>
    %70 = arith.mulf %65, %69 : vector<8x8xf32>
    %cst_33 = arith.constant dense<0.000000e+00> : vector<8x8xf32>
    %71 = tpu.matmul %70, %57, %cst_33 {dimension_numbers = #tpu.dot_dimension_numbers<[1], [0], [0], [1], [0, 0, 1, 1], [], []>} : vector<8x8xf32>, vector<8x8xf32>, vector<8x8xf32> -> vector<8x8xf32>
    %72 = vector.extract_strided_slice %3 {offsets = [16, 0], sizes = [8, 32], strides = [1, 1]} : vector<32x32xf32> to vector<8x32xf32>
    %cst_34 = arith.constant dense<0.000000e+00> : vector<8x32xf32>
    %73 = tpu.matmul %71, %72, %cst_34 {dimension_numbers = #tpu.dot_dimension_numbers<[1], [0], [0], [1], [0, 0, 1, 1], [], []>} : vector<8x8xf32>, vector<8x32xf32>, vector<8x32xf32> -> vector<8x32xf32>
    %74 = arith.addf %54, %73 : vector<8x32xf32>
    %75 = vector.extract_strided_slice %15 {offsets = [0, 24], sizes = [8, 8], strides = [1, 1]} : vector<16x128xf32> to vector<8x8xf32>
    %76 = vector.extract_strided_slice %15 {offsets = [0, 56], sizes = [8, 8], strides = [1, 1]} : vector<16x128xf32> to vector<8x8xf32>
    %77 = vector.extract_strided_slice %15 {offsets = [0, 88], sizes = [8, 8], strides = [1, 1]} : vector<16x128xf32> to vector<8x8xf32>
    %cst_35 = arith.constant dense<0.000000e+00> : vector<8x8xf32>
    %78 = tpu.matmul %75, %76, %cst_35 {dimension_numbers = #tpu.dot_dimension_numbers<[1], [1], [0], [0], [0, 0, 1, 0], [], []>} : vector<8x8xf32>, vector<8x8xf32>, vector<8x8xf32> -> vector<8x8xf32>
    %cst_36 = arith.constant 0.353553385 : f32
    %79 = vector.broadcast %cst_36 : f32 to vector<8x8xf32>
    %80 = arith.mulf %78, %79 : vector<8x8xf32>
    %cst_37 = arith.constant dense<0xFF800000> : vector<8xf32>
    %81 = vector.multi_reduction <maximumf>, %80, %cst_37 [1] : vector<8x8xf32> to vector<8xf32>
    %82 = vector.shape_cast %81 : vector<8xf32> to vector<8x1xf32>
    %83 = vector.broadcast %82 : vector<8x1xf32> to vector<8x8xf32>
    %84 = arith.subf %80, %83 : vector<8x8xf32>
    %85 = math.exp %84 : vector<8x8xf32>
    %cst_38 = arith.constant dense<0.000000e+00> : vector<8xf32>
    %86 = vector.multi_reduction <add>, %85, %cst_38 [1] : vector<8x8xf32> to vector<8xf32>
    %87 = vector.shape_cast %86 : vector<8xf32> to vector<8x1xf32>
    %88 = tpu.reciprocal %87 {approx = true} : vector<8x1xf32> -> vector<8x1xf32>
    %89 = vector.broadcast %88 : vector<8x1xf32> to vector<8x8xf32>
    %90 = arith.mulf %85, %89 : vector<8x8xf32>
    %cst_39 = arith.constant dense<0.000000e+00> : vector<8x8xf32>
    %91 = tpu.matmul %90, %77, %cst_39 {dimension_numbers = #tpu.dot_dimension_numbers<[1], [0], [0], [1], [0, 0, 1, 1], [], []>} : vector<8x8xf32>, vector<8x8xf32>, vector<8x8xf32> -> vector<8x8xf32>
    %92 = vector.extract_strided_slice %3 {offsets = [24, 0], sizes = [8, 32], strides = [1, 1]} : vector<32x32xf32> to vector<8x32xf32>
    %cst_40 = arith.constant dense<0.000000e+00> : vector<8x32xf32>
    %93 = tpu.matmul %91, %92, %cst_40 {dimension_numbers = #tpu.dot_dimension_numbers<[1], [0], [0], [1], [0, 0, 1, 1], [], []>} : vector<8x8xf32>, vector<8x32xf32>, vector<8x32xf32> -> vector<8x32xf32>
    %94 = arith.addf %74, %93 : vector<8x32xf32>
    %95 = vector.extract_strided_slice %15 {offsets = [8, 0], sizes = [8, 8], strides = [1, 1]} : vector<16x128xf32> to vector<8x8xf32>
    %96 = vector.extract_strided_slice %15 {offsets = [8, 32], sizes = [8, 8], strides = [1, 1]} : vector<16x128xf32> to vector<8x8xf32>
    %97 = vector.extract_strided_slice %15 {offsets = [8, 64], sizes = [8, 8], strides = [1, 1]} : vector<16x128xf32> to vector<8x8xf32>
    %cst_41 = arith.constant dense<0.000000e+00> : vector<8x8xf32>
    %98 = tpu.matmul %95, %96, %cst_41 {dimension_numbers = #tpu.dot_dimension_numbers<[1], [1], [0], [0], [0, 0, 1, 0], [], []>} : vector<8x8xf32>, vector<8x8xf32>, vector<8x8xf32> -> vector<8x8xf32>
    %cst_42 = arith.constant 0.353553385 : f32
    %99 = vector.broadcast %cst_42 : f32 to vector<8x8xf32>
    %100 = arith.mulf %98, %99 : vector<8x8xf32>
    %cst_43 = arith.constant dense<0xFF800000> : vector<8xf32>
    %101 = vector.multi_reduction <maximumf>, %100, %cst_43 [1] : vector<8x8xf32> to vector<8xf32>
    %102 = vector.shape_cast %101 : vector<8xf32> to vector<8x1xf32>
    %103 = vector.broadcast %102 : vector<8x1xf32> to vector<8x8xf32>
    %104 = arith.subf %100, %103 : vector<8x8xf32>
    %105 = math.exp %104 : vector<8x8xf32>
    %cst_44 = arith.constant dense<0.000000e+00> : vector<8xf32>
    %106 = vector.multi_reduction <add>, %105, %cst_44 [1] : vector<8x8xf32> to vector<8xf32>
    %107 = vector.shape_cast %106 : vector<8xf32> to vector<8x1xf32>
    %108 = tpu.reciprocal %107 {approx = true} : vector<8x1xf32> -> vector<8x1xf32>
    %109 = vector.broadcast %108 : vector<8x1xf32> to vector<8x8xf32>
    %110 = arith.mulf %105, %109 : vector<8x8xf32>
    %cst_45 = arith.constant dense<0.000000e+00> : vector<8x8xf32>
    %111 = tpu.matmul %110, %97, %cst_45 {dimension_numbers = #tpu.dot_dimension_numbers<[1], [0], [0], [1], [0, 0, 1, 1], [], []>} : vector<8x8xf32>, vector<8x8xf32>, vector<8x8xf32> -> vector<8x8xf32>
    %112 = vector.extract_strided_slice %3 {offsets = [0, 0], sizes = [8, 32], strides = [1, 1]} : vector<32x32xf32> to vector<8x32xf32>
    %cst_46 = arith.constant dense<0.000000e+00> : vector<8x32xf32>
    %113 = tpu.matmul %111, %112, %cst_46 {dimension_numbers = #tpu.dot_dimension_numbers<[1], [0], [0], [1], [0, 0, 1, 1], [], []>} : vector<8x8xf32>, vector<8x32xf32>, vector<8x32xf32> -> vector<8x32xf32>
    %114 = vector.extract_strided_slice %15 {offsets = [8, 8], sizes = [8, 8], strides = [1, 1]} : vector<16x128xf32> to vector<8x8xf32>
    %115 = vector.extract_strided_slice %15 {offsets = [8, 40], sizes = [8, 8], strides = [1, 1]} : vector<16x128xf32> to vector<8x8xf32>
    %116 = vector.extract_strided_slice %15 {offsets = [8, 72], sizes = [8, 8], strides = [1, 1]} : vector<16x128xf32> to vector<8x8xf32>
    %cst_47 = arith.constant dense<0.000000e+00> : vector<8x8xf32>
    %117 = tpu.matmul %114, %115, %cst_47 {dimension_numbers = #tpu.dot_dimension_numbers<[1], [1], [0], [0], [0, 0, 1, 0], [], []>} : vector<8x8xf32>, vector<8x8xf32>, vector<8x8xf32> -> vector<8x8xf32>
    %cst_48 = arith.constant 0.353553385 : f32
    %118 = vector.broadcast %cst_48 : f32 to vector<8x8xf32>
    %119 = arith.mulf %117, %118 : vector<8x8xf32>
    %cst_49 = arith.constant dense<0xFF800000> : vector<8xf32>
    %120 = vector.multi_reduction <maximumf>, %119, %cst_49 [1] : vector<8x8xf32> to vector<8xf32>
    %121 = vector.shape_cast %120 : vector<8xf32> to vector<8x1xf32>
    %122 = vector.broadcast %121 : vector<8x1xf32> to vector<8x8xf32>
    %123 = arith.subf %119, %122 : vector<8x8xf32>
    %124 = math.exp %123 : vector<8x8xf32>
    %cst_50 = arith.constant dense<0.000000e+00> : vector<8xf32>
    %125 = vector.multi_reduction <add>, %124, %cst_50 [1] : vector<8x8xf32> to vector<8xf32>
    %126 = vector.shape_cast %125 : vector<8xf32> to vector<8x1xf32>
    %127 = tpu.reciprocal %126 {approx = true} : vector<8x1xf32> -> vector<8x1xf32>
    %128 = vector.broadcast %127 : vector<8x1xf32> to vector<8x8xf32>
    %129 = arith.mulf %124, %128 : vector<8x8xf32>
    %cst_51 = arith.constant dense<0.000000e+00> : vector<8x8xf32>
    %130 = tpu.matmul %129, %116, %cst_51 {dimension_numbers = #tpu.dot_dimension_numbers<[1], [0], [0], [1], [0, 0, 1, 1], [], []>} : vector<8x8xf32>, vector<8x8xf32>, vector<8x8xf32> -> vector<8x8xf32>
    %131 = vector.extract_strided_slice %3 {offsets = [8, 0], sizes = [8, 32], strides = [1, 1]} : vector<32x32xf32> to vector<8x32xf32>
    %cst_52 = arith.constant dense<0.000000e+00> : vector<8x32xf32>
    %132 = tpu.matmul %130, %131, %cst_52 {dimension_numbers = #tpu.dot_dimension_numbers<[1], [0], [0], [1], [0, 0, 1, 1], [], []>} : vector<8x8xf32>, vector<8x32xf32>, vector<8x32xf32> -> vector<8x32xf32>
    %133 = arith.addf %113, %132 : vector<8x32xf32>
    %134 = vector.extract_strided_slice %15 {offsets = [8, 16], sizes = [8, 8], strides = [1, 1]} : vector<16x128xf32> to vector<8x8xf32>
    %135 = vector.extract_strided_slice %15 {offsets = [8, 48], sizes = [8, 8], strides = [1, 1]} : vector<16x128xf32> to vector<8x8xf32>
    %136 = vector.extract_strided_slice %15 {offsets = [8, 80], sizes = [8, 8], strides = [1, 1]} : vector<16x128xf32> to vector<8x8xf32>
    %cst_53 = arith.constant dense<0.000000e+00> : vector<8x8xf32>
    %137 = tpu.matmul %134, %135, %cst_53 {dimension_numbers = #tpu.dot_dimension_numbers<[1], [1], [0], [0], [0, 0, 1, 0], [], []>} : vector<8x8xf32>, vector<8x8xf32>, vector<8x8xf32> -> vector<8x8xf32>
    %cst_54 = arith.constant 0.353553385 : f32
    %138 = vector.broadcast %cst_54 : f32 to vector<8x8xf32>
    %139 = arith.mulf %137, %138 : vector<8x8xf32>
    %cst_55 = arith.constant dense<0xFF800000> : vector<8xf32>
    %140 = vector.multi_reduction <maximumf>, %139, %cst_55 [1] : vector<8x8xf32> to vector<8xf32>
    %141 = vector.shape_cast %140 : vector<8xf32> to vector<8x1xf32>
    %142 = vector.broadcast %141 : vector<8x1xf32> to vector<8x8xf32>
    %143 = arith.subf %139, %142 : vector<8x8xf32>
    %144 = math.exp %143 : vector<8x8xf32>
    %cst_56 = arith.constant dense<0.000000e+00> : vector<8xf32>
    %145 = vector.multi_reduction <add>, %144, %cst_56 [1] : vector<8x8xf32> to vector<8xf32>
    %146 = vector.shape_cast %145 : vector<8xf32> to vector<8x1xf32>
    %147 = tpu.reciprocal %146 {approx = true} : vector<8x1xf32> -> vector<8x1xf32>
    %148 = vector.broadcast %147 : vector<8x1xf32> to vector<8x8xf32>
    %149 = arith.mulf %144, %148 : vector<8x8xf32>
    %cst_57 = arith.constant dense<0.000000e+00> : vector<8x8xf32>
    %150 = tpu.matmul %149, %136, %cst_57 {dimension_numbers = #tpu.dot_dimension_numbers<[1], [0], [0], [1], [0, 0, 1, 1], [], []>} : vector<8x8xf32>, vector<8x8xf32>, vector<8x8xf32> -> vector<8x8xf32>
    %151 = vector.extract_strided_slice %3 {offsets = [16, 0], sizes = [8, 32], strides = [1, 1]} : vector<32x32xf32> to vector<8x32xf32>
    %cst_58 = arith.constant dense<0.000000e+00> : vector<8x32xf32>
    %152 = tpu.matmul %150, %151, %cst_58 {dimension_numbers = #tpu.dot_dimension_numbers<[1], [0], [0], [1], [0, 0, 1, 1], [], []>} : vector<8x8xf32>, vector<8x32xf32>, vector<8x32xf32> -> vector<8x32xf32>
    %153 = arith.addf %133, %152 : vector<8x32xf32>
    %154 = vector.extract_strided_slice %15 {offsets = [8, 24], sizes = [8, 8], strides = [1, 1]} : vector<16x128xf32> to vector<8x8xf32>
    %155 = vector.extract_strided_slice %15 {offsets = [8, 56], sizes = [8, 8], strides = [1, 1]} : vector<16x128xf32> to vector<8x8xf32>
    %156 = vector.extract_strided_slice %15 {offsets = [8, 88], sizes = [8, 8], strides = [1, 1]} : vector<16x128xf32> to vector<8x8xf32>
    %cst_59 = arith.constant dense<0.000000e+00> : vector<8x8xf32>
    %157 = tpu.matmul %154, %155, %cst_59 {dimension_numbers = #tpu.dot_dimension_numbers<[1], [1], [0], [0], [0, 0, 1, 0], [], []>} : vector<8x8xf32>, vector<8x8xf32>, vector<8x8xf32> -> vector<8x8xf32>
    %cst_60 = arith.constant 0.353553385 : f32
    %158 = vector.broadcast %cst_60 : f32 to vector<8x8xf32>
    %159 = arith.mulf %157, %158 : vector<8x8xf32>
    %cst_61 = arith.constant dense<0xFF800000> : vector<8xf32>
    %160 = vector.multi_reduction <maximumf>, %159, %cst_61 [1] : vector<8x8xf32> to vector<8xf32>
    %161 = vector.shape_cast %160 : vector<8xf32> to vector<8x1xf32>
    %162 = vector.broadcast %161 : vector<8x1xf32> to vector<8x8xf32>
    %163 = arith.subf %159, %162 : vector<8x8xf32>
    %164 = math.exp %163 : vector<8x8xf32>
    %cst_62 = arith.constant dense<0.000000e+00> : vector<8xf32>
    %165 = vector.multi_reduction <add>, %164, %cst_62 [1] : vector<8x8xf32> to vector<8xf32>
    %166 = vector.shape_cast %165 : vector<8xf32> to vector<8x1xf32>
    %167 = tpu.reciprocal %166 {approx = true} : vector<8x1xf32> -> vector<8x1xf32>
    %168 = vector.broadcast %167 : vector<8x1xf32> to vector<8x8xf32>
    %169 = arith.mulf %164, %168 : vector<8x8xf32>
    %cst_63 = arith.constant dense<0.000000e+00> : vector<8x8xf32>
    %170 = tpu.matmul %169, %156, %cst_63 {dimension_numbers = #tpu.dot_dimension_numbers<[1], [0], [0], [1], [0, 0, 1, 1], [], []>} : vector<8x8xf32>, vector<8x8xf32>, vector<8x8xf32> -> vector<8x8xf32>
    %171 = vector.extract_strided_slice %3 {offsets = [24, 0], sizes = [8, 32], strides = [1, 1]} : vector<32x32xf32> to vector<8x32xf32>
    %cst_64 = arith.constant dense<0.000000e+00> : vector<8x32xf32>
    %172 = tpu.matmul %170, %171, %cst_64 {dimension_numbers = #tpu.dot_dimension_numbers<[1], [0], [0], [1], [0, 0, 1, 1], [], []>} : vector<8x8xf32>, vector<8x32xf32>, vector<8x32xf32> -> vector<8x32xf32>
    %173 = arith.addf %153, %172 : vector<8x32xf32>
    %174 = tpu.concatenate %94, %173 in 0 : vector<8x32xf32>, vector<8x32xf32> -> vector<16x32xf32>
    %175 = vector.broadcast %6 : vector<1x32xf32> to vector<16x32xf32>
    %176 = arith.addf %174, %175 : vector<16x32xf32>
    %177 = arith.addf %0, %176 : vector<16x32xf32>
    %cst_65 = arith.constant dense<0.000000e+00> : vector<16xf32>
    %178 = vector.multi_reduction <add>, %177, %cst_65 [1] : vector<16x32xf32> to vector<16xf32>
    %179 = vector.shape_cast %178 : vector<16xf32> to vector<16x1xf32>
    %cst_66 = arith.constant 3.200000e+01 : f32
    %180 = vector.broadcast %cst_66 : f32 to vector<16x1xf32>
    %181 = arith.divf %179, %180 : vector<16x1xf32>
    %182 = vector.broadcast %181 : vector<16x1xf32> to vector<16x32xf32>
    %183 = arith.subf %177, %182 : vector<16x32xf32>
    %184 = arith.mulf %183, %183 : vector<16x32xf32>
    %cst_67 = arith.constant dense<0.000000e+00> : vector<16xf32>
    %185 = vector.multi_reduction <add>, %184, %cst_67 [1] : vector<16x32xf32> to vector<16xf32>
    %186 = vector.shape_cast %185 : vector<16xf32> to vector<16x1xf32>
    %cst_68 = arith.constant 3.200000e+01 : f32
    %187 = vector.broadcast %cst_68 : f32 to vector<16x1xf32>
    %188 = arith.divf %186, %187 : vector<16x1xf32>
    %189 = vector.broadcast %181 : vector<16x1xf32> to vector<16x32xf32>
    %190 = arith.subf %177, %189 : vector<16x32xf32>
    %cst_69 = arith.constant 9.99999974E-6 : f32
    %191 = vector.broadcast %cst_69 : f32 to vector<16x1xf32>
    %192 = arith.addf %188, %191 : vector<16x1xf32>
    %193 = math.rsqrt %192 : vector<16x1xf32>
    %194 = vector.broadcast %193 : vector<16x1xf32> to vector<16x32xf32>
    %195 = arith.mulf %190, %194 : vector<16x32xf32>
    %196 = vector.broadcast %9 : vector<1x32xf32> to vector<16x32xf32>
    %197 = arith.mulf %195, %196 : vector<16x32xf32>
    %198 = vector.broadcast %10 : vector<1x32xf32> to vector<16x32xf32>
    %199 = arith.addf %197, %198 : vector<16x32xf32>
    %cst_70 = arith.constant dense<0.000000e+00> : vector<16x128xf32>
    %200 = tpu.matmul %199, %2, %cst_70 {dimension_numbers = #tpu.dot_dimension_numbers<[1], [0], [0], [1], [0, 0, 1, 1], [], []>} : vector<16x32xf32>, vector<32x128xf32>, vector<16x128xf32> -> vector<16x128xf32>
    %201 = vector.broadcast %7 : vector<1x128xf32> to vector<16x128xf32>
    %202 = arith.addf %200, %201 : vector<16x128xf32>
    %cst_71 = arith.constant 0.000000e+00 : f32
    %203 = vector.broadcast %cst_71 : f32 to vector<16x128xf32>
    %204 = arith.maximumf %202, %203 : vector<16x128xf32>
    %cst_72 = arith.constant dense<0.000000e+00> : vector<16x32xf32>
    %205 = tpu.matmul %204, %4, %cst_72 {dimension_numbers = #tpu.dot_dimension_numbers<[1], [0], [0], [1], [0, 0, 1, 1], [], []>} : vector<16x128xf32>, vector<128x32xf32>, vector<16x32xf32> -> vector<16x32xf32>
    %206 = vector.broadcast %8 : vector<1x32xf32> to vector<16x32xf32>
    %207 = arith.addf %205, %206 : vector<16x32xf32>
    %208 = arith.addf %199, %207 : vector<16x32xf32>
    %cst_73 = arith.constant dense<0.000000e+00> : vector<16xf32>
    %209 = vector.multi_reduction <add>, %208, %cst_73 [1] : vector<16x32xf32> to vector<16xf32>
    %210 = vector.shape_cast %209 : vector<16xf32> to vector<16x1xf32>
    %cst_74 = arith.constant 3.200000e+01 : f32
    %211 = vector.broadcast %cst_74 : f32 to vector<16x1xf32>
    %212 = arith.divf %210, %211 : vector<16x1xf32>
    %213 = vector.broadcast %212 : vector<16x1xf32> to vector<16x32xf32>
    %214 = arith.subf %208, %213 : vector<16x32xf32>
    %215 = arith.mulf %214, %214 : vector<16x32xf32>
    %cst_75 = arith.constant dense<0.000000e+00> : vector<16xf32>
    %216 = vector.multi_reduction <add>, %215, %cst_75 [1] : vector<16x32xf32> to vector<16xf32>
    %217 = vector.shape_cast %216 : vector<16xf32> to vector<16x1xf32>
    %cst_76 = arith.constant 3.200000e+01 : f32
    %218 = vector.broadcast %cst_76 : f32 to vector<16x1xf32>
    %219 = arith.divf %217, %218 : vector<16x1xf32>
    %220 = vector.broadcast %212 : vector<16x1xf32> to vector<16x32xf32>
    %221 = arith.subf %208, %220 : vector<16x32xf32>
    %cst_77 = arith.constant 9.99999974E-6 : f32
    %222 = vector.broadcast %cst_77 : f32 to vector<16x1xf32>
    %223 = arith.addf %219, %222 : vector<16x1xf32>
    %224 = math.rsqrt %223 : vector<16x1xf32>
    %225 = vector.broadcast %224 : vector<16x1xf32> to vector<16x32xf32>
    %226 = arith.mulf %221, %225 : vector<16x32xf32>
    %227 = vector.broadcast %11 : vector<1x32xf32> to vector<16x32xf32>
    %228 = arith.mulf %226, %227 : vector<16x32xf32>
    %229 = vector.broadcast %12 : vector<1x32xf32> to vector<16x32xf32>
    %230 = arith.addf %228, %229 : vector<16x32xf32>
    %c0_78 = arith.constant 0 : index
    %c0_79 = arith.constant 0 : index
    %231 = vector.load %arg4[%c0_78, %c0_79] : memref<16x32xf32, #tpu.memory_space<vmem>>, vector<16x32xf32>
    tpu.vector_store %arg4[%c0_78, %c0_79], %230 {strides = array<i32>} : memref<16x32xf32, #tpu.memory_space<vmem>>, vector<16x32xf32>,
    return
  }
}

</mosaic_0001>

<bundles_post_ra>
// kernel: tpu_custom_call.1
= control target key start
LH: loop header
LB: loop body
LE: loop exit
PB: predicated region body
PF: predicated region fallthrough
CT: control target
= control target key end

     0   :  { %vm60_vm0 = vcmask 261120   ;;  %s3145_s0 = inlined_call_operand.vmem [shape: f32[16,32], index: 0, kind: input, shape index: {}]   ;;  %s3146_s1 = inlined_call_operand.vmem [shape: f32[64,128], index: 1, kind: input, shape index: {}]   ;;  %s3147_s2 = inlined_call_operand.vmem [shape: f32[160,32], index: 2, kind: input, shape index: {}]   ;;  %s3148_s3 = inlined_call_operand.vmem [shape: f32[8,128], index: 3, kind: input, shape index: {}]   ;;  %s3149_s4 = inlined_call_operand.hbm [shape: f32[16,32], index: 4, kind: output, shape index: {}]  }
   0x1   :  { %v20_v0 = vld [vmem:[%s3146_s1] sm:$0xff]  ;;  %v21_v1 = vld [vmem:[%s3146_s1 + $0x8] sm:$0xff]  ;;  %v22_v2 = vld [vmem:[%s3146_s1 + $0x10] sm:$0xff] }
   0x2   :  { %v2627_v3 = vpack.c.bf16 %v21_v1, %v20_v0  ;;  %v23_v4 = vld [vmem:[%s3146_s1 + $0x18] sm:$0xff]  ;;  %v2811_v5 = vld [vmem:[%s3145_s0] sm:$0xff] }
   0x3   :  { %v2631_v6 = vpack.c.bf16 %v23_v4, %v22_v2  ;;  %2458 = vmatprep.mubr.msk.f32.mxu0 %vm60_vm0, %v2811_v5 }
   0x4   :  { %9 = vsyncpa [#allocation3], 0  ;;  %2628 = vmatprep.subr.bf16.mxu0 %v2627_v3  ;;  %v2818_v7 = vld [vmem:[%s3145_s0 + $0x8] sm:$0xff]  ;;  %v2755_v8 = vmov 0.0   ;;  %vm2756_vm1 = vmmov 0   ;;  %s2757_s0 = smov 64  }
   0x5   :  { %2630 = vmatpush3.bf16.msra.mxu0 %v2627_v3  ;;  %2486 = vmatprep.subr.mxu1 %v2755_v8  ;;  %v2328_v9 = vld [vmem:[%s3148_s3] ss:$0 sm:$0xff]  ;;  %s2758_s29 = smov 96   ;;  %s2759_s30 = smov 88   ;;  %vm145_vm2 = vcmask 64512   ;;  %v2882_v48 = vld [vmem:[%s3147_s2 + $0x8] sm:$0xff] }
   0x6   :  { %2632 = vmatprep.subr.bf16.mxu0 %v2631_v6  ;;  %2488 = vmatprep.mubr.msk.f32.mxu1 %vm2756_vm1, %v2755_v8  ;;  %s2760_s5 = smov 120   ;;  %v2863_v30 = vld [vmem:[%s3147_s2] sm:$0xff]  ;;  %s2761_s8 = smov 56   ;;  %v2913_v2 = vld [vmem:[%s3147_s2 + $0x10] sm:$0xff] }
   0x7   :  { %2487 = vmatpush3.msra.mxu1 %v2863_v30  ;;  %s2762_s9 = smov 80   ;;  %s2763_s10 = smov 112  }
   0x8   :  { %2496 = vmatprep.subr.mxu1 %v2755_v8  ;;  %s2764_s13 = smov 48   ;;  %s2765_s14 = smov 72  }
   0x9   :  { %2634 = vmatpush3.bf16.msra.mxu0 %v2631_v6  ;;  %s2766_s15 = smov 104   ;;  %s2767_s16 = smov 40  }
   0xa   :  { %2461 = vmatprep.subr.mxu0 %v2755_v8  ;;  %s2768_s18 = smov [#allocation2]  }
   0xb   :  { %s2317_s19 = sshll.u32 %s2768_s18, 4  ;;  %s2318_s19 = int_to_ptr.vmem [resolvable:$true] %s2317_s19 }
   0xc   :  { %2459 = vmatmul.mubr.msk.f32.vlgmr.msra.gmra.mrb[0].mxu0 %vm60_vm0, %v2818_v7  ;;  %s2731_s20 = scalar_lea.vmem %s2318_s19, 256  ;;  %p2736_p1 = scmp.lt.s32.totalorder %s2318_s19, %s2318_s19 }
   0xd   :  { %2463 = vmatprep.mubr.msk.f32.mxu0 %vm2756_vm1, %v2755_v8  ;;  %p2732_p0 = scmp.ne.s32.totalorder %s2318_s19, %s2731_s20  ;;  %p2737_p2 = scmp.lt.s32.totalorder %s2731_s20, %s2731_s20 }
   0xf   :  { %p2738_p3 = por %p2737_p2, %p2736_p1 }
  0x11   :  { %p2739_p4 = pnand %p2738_p3, %p2732_p0 }
  0xdf   :  { %v2460_v10 = vpop.f32.mrb[0].mxu0 }
  0xe0   :  { %v2831_v11 = vadd.f32 %v2460_v10, %v2328_v9  ;;  %v133_v12 = vpop.f32.mrb[1].mxu0 }
  0xe1   :  { %v2833_v13 = vadd.f32 %v2328_v9, %v133_v12 }
  0xe3   :  { %232 = vrot.lane.b32.xlu1 %v2833_v13, %s2757_s0  ;;  %143 = vrot.lane.b32.xlu0 %v2833_v13, %s2758_s29 }
  0xe7   :  { %310 = vrot.lane.b32.xlu1 %v2833_v13, %s2759_s30 }
 0x155   :  { %v144_v14 = vpop.permute.xlu0 %143  ;;  %v233_v15 = vpop.permute.xlu1 %232 }
 0x156   :  { %2462 = vmatpush3.xpose.msk.msra.mxu0 %vm145_vm2, %v144_v14 }
 0x157   :  { %2466 = vmatprep.subr.mxu0 %v2755_v8 }
 0x159   :  { %2464 = vmatmul.mubr.msk.f32.vlgmr.msra.gmra.mrb[2].mxu0 %vm145_vm2, %v2833_v13  ;;  %v311_v25 = vpop.permute.xlu1 %310 }
 0x15a   :  { %2467 = vmatpush3.msra.mxu0 %v233_v15  ;;  %2468 = vmatprep.mubr.msk.f32.mxu0 %vm2756_vm1, %v2755_v8 }
 0x15b   :  { %2471 = vmatprep.subr.mxu0 %v2755_v8 }
 0x22c   :  { %v216_v16 = vpop.f32.mrb[2].mxu0 }
 0x22d   :  { %v220_v17 = vmul.f32 0.35355338, %v216_v16  ;;  %v2465_v18 = vpop.f32.mrb[3].mxu0 }
 0x22f   :  { %v221_v19 = vsel %vm145_vm2, %v220_v17, -inf }
 0x230   :  { %222 = vmax.xlane.f32.xlu0 %v221_v19 }
 0x2bd   :  { %v223_v20 = vpop.xlane.xlu0 %222 }
 0x2be   :  { %v224_v21 = vsub.f32 %v220_v17, %v223_v20 }
 0x2c0   :  { %v225_v22 = vmul.f32 1.442695, %v224_v21 }
 0x2c2   :  { %2691 = vpow2.f32 %v225_v22 }
 0x2cc   :  { %v2692_v23 = vpop.eup %2691 }
 0x2cd   :  { %v227_v24 = vsel %vm145_vm2, %v2692_v23, 0.0 }
 0x2ce   :  { %228 = vadd.xlane.f32.xlu1 %v227_v24 }
 0x2df   :  { %308 = vrot.lane.b32.xlu1 %v2833_v13, %s2760_s5 }
 0x35b   :  { %v229_v26 = vpop.xlane.xlu1 %228 }
 0x35c   :  { %2693 = vrcp.f32 %v229_v26 }
 0x35f   :  { %v309_v29 = vpop.permute.xlu1 %308 }
 0x366   :  { %v2694_v27 = vpop.eup %2693 }
 0x367   :  { %v231_v28 = vmul.f32 %v2694_v27, %v2692_v23 }
 0x369   :  { %2469 = vmatmul.mubr.msk.f32.vlgmr.msra.gmra.mrb[4].mxu0 %vm145_vm2, %v231_v28 }
 0x36a   :  { %2472 = vmatpush3.xpose.msk.msra.mxu0 %vm145_vm2, %v311_v25  ;;  %2473 = vmatprep.mubr.msk.f32.mxu0 %vm2756_vm1, %v2755_v8 }
 0x36b   :  { %2476 = vmatprep.subr.mxu0 %v2755_v8 }
 0x36d   :  { %2474 = vmatmul.mubr.msk.f32.vlgmr.msra.gmra.mrb[6].mxu0 %vm145_vm2, %v309_v29 }
 0x36e   :  { %2478 = vmatprep.mubr.msk.f32.mxu0 %vm2756_vm1, %v2755_v8 }
 0x43c   :  { %v304_v31 = vpop.f32.mrb[4].mxu0 }
 0x43d   :  { %v2470_v32 = vpop.f32.mrb[5].mxu0  ;;  %2489 = vmatmul.mubr.msk.f32.vlgmr.msra.gmra.mrb[0].mxu1 %vm145_vm2, %v304_v31 }
 0x43e   :  { %2498 = vmatprep.mubr.msk.f32.mxu1 %vm2756_vm1, %v2755_v8 }
 0x440   :  { %v382_v33 = vpop.f32.mrb[6].mxu0 }
 0x441   :  { %v386_v34 = vmul.f32 0.35355338, %v382_v33  ;;  %v2475_v35 = vpop.f32.mrb[7].mxu0 }
 0x443   :  { %v387_v36 = vsel %vm145_vm2, %v386_v34, -inf }
 0x444   :  { %388 = vmax.xlane.f32.xlu1 %v387_v36 }
 0x4d1   :  { %v389_v37 = vpop.xlane.xlu1 %388 }
 0x4d2   :  { %v390_v38 = vsub.f32 %v386_v34, %v389_v37  ;;  %v2957_v34 = vld [vmem:[%s3147_s2 + $0x18] sm:$0xff] }
 0x4d4   :  { %v391_v39 = vmul.f32 1.442695, %v390_v38 }
 0x4d6   :  { %2695 = vpow2.f32 %v391_v39 }
 0x4e0   :  { %v2696_v40 = vpop.eup %2695 }
 0x4e1   :  { %v393_v41 = vsel %vm145_vm2, %v2696_v40, 0.0 }
 0x4e2   :  { %394 = vadd.xlane.f32.xlu0 %v393_v41 }
 0x4f8   :  { %398 = vrot.lane.b32.xlu0 %v2833_v13, %s2761_s8 }
 0x4fc   :  { %622 = vrot.lane.b32.xlu0 %v2833_v13, %s2762_s9 }
 0x500   :  { %620 = vrot.lane.b32.xlu0 %v2833_v13, %s2763_s10 }
 0x510   :  { %v616_v42 = vpop.f32.mrb[0].mxu1 }
 0x511   :  { %v2490_v43 = vpop.f32.mrb[1].mxu1 }
 0x56f   :  { %v395_v44 = vpop.xlane.xlu0 %394 }
 0x570   :  { %2697 = vrcp.f32 %v395_v44 }
 0x573   :  { %v399_v45 = vpop.permute.xlu0 %398 }
 0x574   :  { %2477 = vmatpush3.msra.mxu0 %v399_v45 }
 0x575   :  { %2481 = vmatprep.subr.mxu0 %v2755_v8 }
 0x577   :  { %v623_v49 = vpop.permute.xlu0 %622 }
 0x57a   :  { %v2698_v46 = vpop.eup %2697 }
 0x57b   :  { %v397_v47 = vmul.f32 %v2698_v46, %v2696_v40  ;;  %v621_v52 = vpop.permute.xlu0 %620 }
 0x57d   :  { %2479 = vmatmul.mubr.msk.f32.vlgmr.msra.gmra.mrb[8].mxu0 %vm145_vm2, %v397_v47 }
 0x57e   :  { %2482 = vmatpush3.msra.mxu0 %v2882_v48  ;;  %2483 = vmatprep.mubr.msk.f32.mxu0 %vm2756_vm1, %v2755_v8 }
 0x57f   :  { %2491 = vmatprep.subr.mxu0 %v2755_v8 }
 0x650   :  { %v470_v50 = vpop.f32.mrb[8].mxu0 }
 0x651   :  { %v2480_v51 = vpop.f32.mrb[9].mxu0  ;;  %2484 = vmatmul.mubr.msk.f32.vlgmr.msra.gmra.mrb[10].mxu0 %vm145_vm2, %v470_v50 }
 0x652   :  { %2492 = vmatpush3.xpose.msk.msra.mxu0 %vm145_vm2, %v623_v49  ;;  %2493 = vmatprep.mubr.msk.f32.mxu0 %vm2756_vm1, %v2755_v8 }
 0x653   :  { %2501 = vmatprep.subr.mxu0 %v2755_v8 }
 0x655   :  { %2494 = vmatmul.mubr.msk.f32.vlgmr.msra.gmra.mrb[12].mxu0 %vm145_vm2, %v621_v52 }
 0x656   :  { %2503 = vmatprep.mubr.msk.f32.mxu0 %vm2756_vm1, %v2755_v8  ;;  %2502 = vmatpush3.msra.mxu0 %v2913_v2 }
 0x657   :  { %2511 = vmatprep.subr.mxu0 %v2755_v8 }
 0x724   :  { %v543_v53 = vpop.f32.mrb[10].mxu0 }
 0x725   :  { %v2897_v54 = vadd.f32 %v616_v42, %v543_v53  ;;  %v2485_v55 = vpop.f32.mrb[11].mxu0 }
 0x728   :  { %v694_v56 = vpop.f32.mrb[12].mxu0 }
 0x729   :  { %v698_v57 = vmul.f32 0.35355338, %v694_v56  ;;  %v2495_v58 = vpop.f32.mrb[13].mxu0 }
 0x72b   :  { %v699_v59 = vsel %vm145_vm2, %v698_v57, -inf }
 0x72c   :  { %700 = vmax.xlane.f32.xlu1 %v699_v59 }
 0x73d   :  { %710 = vrot.lane.b32.xlu1 %v2833_v13, %s2764_s13 }
 0x741   :  { %862 = vrot.lane.b32.xlu1 %v2833_v13, %s2765_s14 }
 0x745   :  { %860 = vrot.lane.b32.xlu1 %v2833_v13, %s2766_s15 }
 0x7b9   :  { %v701_v60 = vpop.xlane.xlu1 %700 }
 0x7ba   :  { %v702_v61 = vsub.f32 %v698_v57, %v701_v60 }
 0x7bc   :  { %v703_v62 = vmul.f32 1.442695, %v702_v61 }
 0x7bd   :  { %v711_v63 = vpop.permute.xlu1 %710 }
 0x7be   :  { %2699 = vpow2.f32 %v703_v62  ;;  %2497 = vmatpush3.msra.mxu1 %v711_v63 }
 0x7bf   :  { %2506 = vmatprep.subr.mxu1 %v2755_v8 }
 0x7c1   :  { %v863_v6 = vpop.permute.xlu1 %862 }
 0x7c5   :  { %v861_v10 = vpop.permute.xlu1 %860 }
 0x7c8   :  { %v2700_v0 = vpop.eup %2699 }
 0x7c9   :  { %v705_v1 = vsel %vm145_vm2, %v2700_v0, 0.0 }
 0x7ca   :  { %706 = vadd.xlane.f32.xlu0 %v705_v1 }
 0x7e0   :  { %950 = vrot.lane.b32.xlu0 %v2833_v13, %s2767_s16 }
 0x857   :  { %v707_v3 = vpop.xlane.xlu0 %706 }
 0x858   :  { %2701 = vrcp.f32 %v707_v3 }
 0x85b   :  { %v951_v13 = vpop.permute.xlu0 %950 }
 0x862   :  { %v2702_v4 = vpop.eup %2701 }
 0x863   :  { %v709_v9 = vmul.f32 %v2702_v4, %v2700_v0 }
 0x865   :  { %2499 = vmatmul.mubr.msk.f32.vlgmr.msra.gmra.mrb[2].mxu1 %vm145_vm2, %v709_v9 }
 0x866   :  { %2507 = vmatpush3.xpose.msk.msra.mxu1 %vm145_vm2, %v863_v6  ;;  %2508 = vmatprep.mubr.msk.f32.mxu1 %vm2756_vm1, %v2755_v8 }
 0x867   :  { %2516 = vmatprep.subr.mxu1 %v2755_v8 }
 0x869   :  { %2509 = vmatmul.mubr.msk.f32.vlgmr.msra.gmra.mrb[4].mxu1 %vm145_vm2, %v861_v10 }
 0x86a   :  { %2518 = vmatprep.mubr.msk.f32.mxu1 %vm2756_vm1, %v2755_v8  ;;  %2517 = vmatpush3.msra.mxu1 %v2957_v34 }
 0x86b   :  { %2526 = vmatprep.subr.mxu1 %v2755_v8 }
 0x938   :  { %v782_v12 = vpop.f32.mrb[2].mxu1 }
 0x939   :  { %v2500_v14 = vpop.f32.mrb[3].mxu1  ;;  %2504 = vmatmul.mubr.msk.f32.vlgmr.msra.gmra.mrb[14].mxu0 %vm145_vm2, %v782_v12 }
 0x93a   :  { %2512 = vmatpush3.msra.mxu0 %v951_v13  ;;  %2513 = vmatprep.mubr.msk.f32.mxu0 %vm2756_vm1, %v2755_v8 }
 0x93b   :  { %2521 = vmatprep.subr.mxu0 %v2755_v8 }
 0x93c   :  { %v934_v15 = vpop.f32.mrb[4].mxu1 }
 0x93d   :  { %v938_v16 = vmul.f32 0.35355338, %v934_v15  ;;  %v2510_v17 = vpop.f32.mrb[5].mxu1 }
 0x93f   :  { %v939_v18 = vsel %vm145_vm2, %v938_v16, -inf }
 0x940   :  { %940 = vmax.xlane.f32.xlu1 %v939_v18 }
 0x951   :  { %1265 = vrot.lane.b32.xlu1 %v2831_v11, %s2760_s5 }
 0x9cd   :  { %v941_v19 = vpop.xlane.xlu1 %940 }
 0x9ce   :  { %v942_v20 = vsub.f32 %v938_v16, %v941_v19 }
 0x9d0   :  { %v943_v21 = vmul.f32 1.442695, %v942_v20 }
 0x9d1   :  { %v1266_v33 = vpop.permute.xlu1 %1265 }
 0x9d2   :  { %2703 = vpow2.f32 %v943_v21 }
 0x9dc   :  { %v2704_v22 = vpop.eup %2703 }
 0x9dd   :  { %v945_v23 = vsel %vm145_vm2, %v2704_v22, 0.0 }
 0x9de   :  { %946 = vadd.xlane.f32.xlu0 %v945_v23 }
 0x9f4   :  { %1101 = vrot.lane.b32.xlu0 %v2831_v11, %s2758_s29 }
 0x9f8   :  { %1267 = vrot.lane.b32.xlu0 %v2831_v11, %s2759_s30 }
 0xa0c   :  { %v855_v24 = vpop.f32.mrb[14].mxu0 }
 0xa0d   :  { %v859_v25 = vadd.f32 %v855_v24, %v2897_v54  ;;  %v2505_v26 = vpop.f32.mrb[15].mxu0 }
 0xa6b   :  { %v947_v27 = vpop.xlane.xlu0 %946 }
 0xa6c   :  { %2705 = vrcp.f32 %v947_v27 }
 0xa6f   :  { %v1102_v31 = vpop.permute.xlu0 %1101 }
 0xa73   :  { %v1268_v32 = vpop.permute.xlu0 %1267 }
 0xa76   :  { %v2706_v28 = vpop.eup %2705 }
 0xa77   :  { %v949_v29 = vmul.f32 %v2706_v28, %v2704_v22 }
 0xa79   :  { %2514 = vmatmul.mubr.msk.f32.vlgmr.msra.gmra.mrb[16].mxu0 %vm145_vm2, %v949_v29 }
 0xa7a   :  { %2522 = vmatpush3.xpose.msk.msra.mxu0 %vm145_vm2, %v1102_v31  ;;  %2523 = vmatprep.mubr.msk.f32.mxu0 %vm2756_vm1, %v2755_v8 }
 0xa7b   :  { %2531 = vmatprep.subr.mxu0 %v2755_v8 }
 0xa7d   :  { %2524 = vmatmul.mubr.msk.f32.vlgmr.msra.gmra.mrb[18].mxu0 %vm145_vm2, %v2831_v11 }
 0xa7e   :  { %2532 = vmatpush3.xpose.msk.msra.mxu0 %vm145_vm2, %v1268_v32  ;;  %2533 = vmatprep.mubr.msk.f32.mxu0 %vm2756_vm1, %v2755_v8 }
 0xa7f   :  { %2541 = vmatprep.subr.mxu0 %v2755_v8 }
 0xa81   :  { %2534 = vmatmul.mubr.msk.f32.vlgmr.msra.gmra.mrb[20].mxu0 %vm145_vm2, %v1266_v33 }
 0xa82   :  { %2542 = vmatpush3.msra.mxu0 %v2882_v48  ;;  %2543 = vmatprep.mubr.msk.f32.mxu0 %vm2756_vm1, %v2755_v8 }
 0xa83   :  { %2551 = vmatprep.subr.mxu0 %v2755_v8 }
 0xb4c   :  { %v1022_v35 = vpop.f32.mrb[16].mxu0 }
 0xb4d   :  { %v2515_v36 = vpop.f32.mrb[17].mxu0  ;;  %2519 = vmatmul.mubr.msk.f32.vlgmr.msra.gmra.mrb[6].mxu1 %vm145_vm2, %v1022_v35 }
 0xb4e   :  { %2528 = vmatprep.mubr.msk.f32.mxu1 %vm2756_vm1, %v2755_v8 }
 0xb50   :  { %v1173_v37 = vpop.f32.mrb[18].mxu0 }
 0xb51   :  { %v1177_v38 = vmul.f32 0.35355338, %v1173_v37  ;;  %v2525_v39 = vpop.f32.mrb[19].mxu0 }
 0xb53   :  { %v1178_v40 = vsel %vm145_vm2, %v1177_v38, -inf }
 0xb54   :  { %1179 = vmax.xlane.f32.xlu0 %v1178_v40  ;;  %v1339_v41 = vpop.f32.mrb[20].mxu0 }
 0xb55   :  { %v1343_v42 = vmul.f32 0.35355338, %v1339_v41  ;;  %v2535_v43 = vpop.f32.mrb[21].mxu0 }
 0xb57   :  { %v1344_v44 = vsel %vm145_vm2, %v1343_v42, -inf }
 0xb58   :  { %1345 = vmax.xlane.f32.xlu1 %v1344_v44 }
 0xb69   :  { %1355 = vrot.lane.b32.xlu1 %v2831_v11, %s2761_s8 }
 0xbe1   :  { %v1180_v45 = vpop.xlane.xlu0 %1179 }
 0xbe2   :  { %v1181_v46 = vsub.f32 %v1177_v38, %v1180_v45 }
 0xbe4   :  { %v1182_v47 = vmul.f32 1.442695, %v1181_v46 }
 0xbe5   :  { %v1346_v48 = vpop.xlane.xlu1 %1345 }
 0xbe6   :  { %2707 = vpow2.f32 %v1182_v47  ;;  %v1347_v49 = vsub.f32 %v1343_v42, %v1346_v48  ;;  %v2363_v42 = vld [vmem:[%s3148_s3 + $0x1] ss:$0 sm:$0xff] }
 0xbe8   :  { %v1348_v50 = vmul.f32 1.442695, %v1347_v49 }
 0xbe9   :  { %v1356_v63 = vpop.permute.xlu1 %1355 }
 0xbea   :  { %2709 = vpow2.f32 %v1348_v50 }
 0xbf0   :  { %v2708_v51 = vpop.eup %2707 }
 0xbf1   :  { %v1184_v52 = vsel %vm145_vm2, %v2708_v51, 0.0 }
 0xbf2   :  { %1185 = vadd.xlane.f32.xlu0 %v1184_v52 }
 0xbf4   :  { %v2710_v53 = vpop.eup %2709 }
 0xbf5   :  { %v1350_v54 = vsel %vm145_vm2, %v2710_v53, 0.0 }
 0xbf6   :  { %1351 = vadd.xlane.f32.xlu0 %v1350_v54 }
 0xc0c   :  { %1189 = vrot.lane.b32.xlu0 %v2831_v11, %s2757_s0 }
 0xc10   :  { %1579 = vrot.lane.b32.xlu0 %v2831_v11, %s2762_s9 }
 0xc14   :  { %1577 = vrot.lane.b32.xlu0 %v2831_v11, %s2763_s10 }
 0xc20   :  { %v1095_v55 = vpop.f32.mrb[6].mxu1 }
 0xc21   :  { %v2976_v56 = vadd.f32 %v1095_v55, %v859_v25  ;;  %v2520_v57 = vpop.f32.mrb[7].mxu1 }
 0xc7f   :  { %v1186_v58 = vpop.xlane.xlu0 %1185 }
 0xc80   :  { %2711 = vrcp.f32 %v1186_v58 }
 0xc83   :  { %v1352_v59 = vpop.xlane.xlu0 %1351 }
 0xc84   :  { %2713 = vrcp.f32 %v1352_v59 }
 0xc87   :  { %v1190_v60 = vpop.permute.xlu0 %1189 }
 0xc88   :  { %2527 = vmatpush3.msra.mxu1 %v1190_v60 }
 0xc89   :  { %2536 = vmatprep.subr.mxu1 %v2755_v8 }
 0xc8a   :  { %v2712_v61 = vpop.eup %2711 }
 0xc8b   :  { %v1188_v62 = vmul.f32 %v2712_v61, %v2708_v51  ;;  %v1580_v6 = vpop.permute.xlu0 %1579 }
 0xc8d   :  { %2529 = vmatmul.mubr.msk.f32.vlgmr.msra.gmra.mrb[8].mxu1 %vm145_vm2, %v1188_v62 }
 0xc8e   :  { %v2714_v0 = vpop.eup %2713  ;;  %2537 = vmatpush3.msra.mxu1 %v1356_v63  ;;  %2538 = vmatprep.mubr.msk.f32.mxu1 %vm2756_vm1, %v2755_v8 }
 0xc8f   :  { %v1354_v1 = vmul.f32 %v2714_v0, %v2710_v53  ;;  %2546 = vmatprep.subr.mxu1 %v2755_v8 }
 0xc91   :  { %2539 = vmatmul.mubr.msk.f32.vlgmr.msra.gmra.mrb[10].mxu1 %vm145_vm2, %v1354_v1 }
 0xc92   :  { %2547 = vmatpush3.msra.mxu1 %v2863_v30  ;;  %2548 = vmatprep.mubr.msk.f32.mxu1 %vm2756_vm1, %v2755_v8  ;;  %v1578_v30 = vpop.permute.xlu0 %1577 }
 0xc93   :  { %2556 = vmatprep.subr.mxu1 %v2755_v8 }
 0xd60   :  { %v1261_v3 = vpop.f32.mrb[8].mxu1 }
 0xd61   :  { %v2530_v4 = vpop.f32.mrb[9].mxu1  ;;  %2549 = vmatmul.mubr.msk.f32.vlgmr.msra.gmra.mrb[12].mxu1 %vm145_vm2, %v1261_v3 }
 0xd62   :  { %2558 = vmatprep.mubr.msk.f32.mxu1 %vm2756_vm1, %v2755_v8 }
 0xd64   :  { %v1427_v9 = vpop.f32.mrb[10].mxu1 }
 0xd65   :  { %v2540_v10 = vpop.f32.mrb[11].mxu1  ;;  %2544 = vmatmul.mubr.msk.f32.vlgmr.msra.gmra.mrb[22].mxu0 %vm145_vm2, %v1427_v9 }
 0xd66   :  { %2552 = vmatpush3.xpose.msk.msra.mxu0 %vm145_vm2, %v1580_v6  ;;  %2553 = vmatprep.mubr.msk.f32.mxu0 %vm2756_vm1, %v2755_v8 }
 0xd67   :  { %2561 = vmatprep.subr.mxu0 %v2755_v8 }
 0xd69   :  { %2554 = vmatmul.mubr.msk.f32.vlgmr.msra.gmra.mrb[24].mxu0 %vm145_vm2, %v1578_v30 }
 0xd6a   :  { %2562 = vmatpush3.msra.mxu0 %v2913_v2  ;;  %2563 = vmatprep.mubr.msk.f32.mxu0 %vm2756_vm1, %v2755_v8 }
 0xd6b   :  { %2571 = vmatprep.subr.mxu0 %v2755_v8 }
 0xe34   :  { %v1573_v12 = vpop.f32.mrb[12].mxu1 }
 0xe35   :  { %v2550_v13 = vpop.f32.mrb[13].mxu1 }
 0xe38   :  { %v1500_v14 = vpop.f32.mrb[22].mxu0 }
 0xe39   :  { %v1574_v15 = vadd.f32 %v1573_v12, %v1500_v14  ;;  %v2545_v16 = vpop.f32.mrb[23].mxu0  ;;  %v2364_v12 = vld [vmem:[%s3148_s3 + $0x4] ss:$0 sm:$0xff]  ;;  %v2365_v14 = vld [vmem:[%s3148_s3 + $0x5] ss:$0 sm:$0xff] }
 0xe3c   :  { %v1651_v17 = vpop.f32.mrb[24].mxu0 }
 0xe3d   :  { %v1655_v18 = vmul.f32 0.35355338, %v1651_v17  ;;  %v2555_v19 = vpop.f32.mrb[25].mxu0  ;;  %v24_v17 = vld [vmem:[%s3146_s1 + $0x20] sm:$0xff] }
 0xe3f   :  { %v1656_v20 = vsel %vm145_vm2, %v1655_v18, -inf }
 0xe40   :  { %1657 = vmax.xlane.f32.xlu1 %v1656_v20  ;;  %v26_v20 = vld [vmem:[%s3146_s1 + $0x30] sm:$0xff] }
 0xe51   :  { %1819 = vrot.lane.b32.xlu1 %v2831_v11, %s2765_s14 }
 0xe55   :  { %1817 = vrot.lane.b32.xlu1 %v2831_v11, %s2766_s15 }
 0xecd   :  { %v1658_v2 = vpop.xlane.xlu1 %1657 }
 0xece   :  { %v1659_v21 = vsub.f32 %v1655_v18, %v1658_v2  ;;  %v25_v18 = vld [vmem:[%s3146_s1 + $0x28] sm:$0xff]  ;;  %v27_v2 = vld [vmem:[%s3146_s1 + $0x38] sm:$0xff] }
 0xecf   :  { %v2635_v19 = vpack.c.bf16 %v25_v18, %v24_v17 }
 0xed0   :  { %v1660_v22 = vmul.f32 1.442695, %v1659_v21  ;;  %v2639_v21 = vpack.c.bf16 %v27_v2, %v26_v20 }
 0xed1   :  { %v1820_v28 = vpop.permute.xlu1 %1819 }
 0xed2   :  { %2715 = vpow2.f32 %v1660_v22  ;;  %v32_v22 = vld [vmem:[%s3147_s2 + $0x20] sm:$0xff] }
 0xed5   :  { %v1818_v31 = vpop.permute.xlu1 %1817 }
 0xedc   :  { %v2716_v23 = vpop.eup %2715 }
 0xedd   :  { %v1662_v24 = vsel %vm145_vm2, %v2716_v23, 0.0 }
 0xede   :  { %1663 = vadd.xlane.f32.xlu0 %v1662_v24  ;;  %v34_v24 = vld [vmem:[%s3147_s2 + $0x30] sm:$0xff] }
 0xef4   :  { %1667 = vrot.lane.b32.xlu0 %v2831_v11, %s2764_s13 }
 0xf6b   :  { %v1664_v25 = vpop.xlane.xlu0 %1663 }
 0xf6c   :  { %2717 = vrcp.f32 %v1664_v25 }
 0xf6f   :  { %v1668_v26 = vpop.permute.xlu0 %1667 }
 0xf70   :  { %2557 = vmatpush3.msra.mxu1 %v1668_v26  ;;  %v35_v26 = vld [vmem:[%s3147_s2 + $0x38] sm:$0xff] }
 0xf71   :  { %2566 = vmatprep.subr.mxu1 %v2755_v8 }
 0xf76   :  { %v2718_v27 = vpop.eup %2717 }
 0xf77   :  { %v1666_v29 = vmul.f32 %v2718_v27, %v2716_v23  ;;  %v33_v23 = vld [vmem:[%s3147_s2 + $0x28] sm:$0xff]  ;;  %v2647_v27 = vpack.c.bf16 %v35_v26, %v34_v24  ;;  %v2371_v24 = vld [vmem:[%s3148_s3 + $0x7] ss:$0 sm:$0xff] }
 0xf78   :  { %v2643_v25 = vpack.c.bf16 %v33_v23, %v32_v22  ;;  %v2370_v22 = vld [vmem:[%s3148_s3 + $0x6] ss:$0 sm:$0xff] }
 0xf79   :  { %2559 = vmatmul.mubr.msk.f32.vlgmr.msra.gmra.mrb[14].mxu1 %vm145_vm2, %v1666_v29  ;;  %v37_v29 = vld [vmem:[%s3147_s2 + $0x48] sm:$0xff] }
 0xf7a   :  { %2567 = vmatpush3.xpose.msk.msra.mxu1 %vm145_vm2, %v1820_v28  ;;  %2568 = vmatprep.mubr.msk.f32.mxu1 %vm2756_vm1, %v2755_v8  ;;  %v36_v28 = vld [vmem:[%s3147_s2 + $0x40] sm:$0xff] }
 0xf7b   :  { %2576 = vmatprep.subr.mxu1 %v2755_v8 }
 0xf7d   :  { %2569 = vmatmul.mubr.msk.f32.vlgmr.msra.gmra.mrb[16].mxu1 %vm145_vm2, %v1818_v31  ;;  %v2651_v31 = vpack.c.bf16 %v37_v29, %v36_v28 }
 0xf7e   :  { %2577 = vmatpush3.msra.mxu1 %v2957_v34  ;;  %2578 = vmatprep.mubr.msk.f32.mxu1 %vm2756_vm1, %v2755_v8 }
 0xf7f   :  { %2644 = vmatprep.subr.bf16.mxu1 %v2643_v25 }
0x104c   :  { %v1739_v32 = vpop.f32.mrb[14].mxu1 }
0x104d   :  { %v2560_v33 = vpop.f32.mrb[15].mxu1  ;;  %2564 = vmatmul.mubr.msk.f32.vlgmr.msra.gmra.mrb[26].mxu0 %vm145_vm2, %v1739_v32  ;;  %v38_v32 = vld [vmem:[%s3147_s2 + $0x50] sm:$0xff] }
0x104e   :  { %2573 = vmatprep.mubr.msk.f32.mxu0 %vm2756_vm1, %v2755_v8  ;;  %v2061_v8 = vadd.f32 %v2363_v42, %v2976_v56  ;;  %v39_v33 = vld [vmem:[%s3147_s2 + $0x58] sm:$0xff] }
0x1050   :  { %v1891_v35 = vpop.f32.mrb[16].mxu1  ;;  %v2063_v45 = vadd.f32 %v2061_v8, %v2811_v5 }
0x1051   :  { %v1895_v36 = vmul.f32 0.35355338, %v1891_v35  ;;  %v2570_v37 = vpop.f32.mrb[17].mxu1  ;;  %v2655_v35 = vpack.c.bf16 %v39_v33, %v38_v32 }
0x1052   :  { %v41_v37 = vld [vmem:[%s3147_s2 + $0x68] sm:$0xff] }
0x1053   :  { %v1896_v38 = vsel %vm145_vm2, %v1895_v36, -inf }
0x1054   :  { %1897 = vmax.xlane.f32.xlu0 %v1896_v38 }
0x106a   :  { %1907 = vrot.lane.b32.xlu0 %v2831_v11, %s2767_s16  ;;  %v2065_v11 = vsel %vm60_vm0, %v2063_v45, 0.0 }
0x10e1   :  { %v1898_v34 = vpop.xlane.xlu0 %1897 }
0x10e2   :  { %v1899_v39 = vsub.f32 %v1895_v36, %v1898_v34  ;;  %v40_v36 = vld [vmem:[%s3147_s2 + $0x60] sm:$0xff]  ;;  %v42_v34 = vld [vmem:[%s3147_s2 + $0x70] sm:$0xff] }
0x10e3   :  { %v2659_v38 = vpack.c.bf16 %v41_v37, %v40_v36 }
0x10e4   :  { %v1900_v40 = vmul.f32 1.442695, %v1899_v39  ;;  %v43_v39 = vld [vmem:[%s3147_s2 + $0x78] sm:$0xff] }
0x10e5   :  { %v1908_v41 = vpop.permute.xlu0 %1907 }
0x10e6   :  { %2719 = vpow2.f32 %v1900_v40  ;;  %2572 = vmatpush3.msra.mxu0 %v1908_v41  ;;  %v2663_v40 = vpack.c.bf16 %v43_v39, %v42_v34  ;;  %v44_v41 = vld [vmem:[%s3147_s2 + $0x80] sm:$0xff] }
0x10e7   :  { %2636 = vmatprep.subr.bf16.mxu0 %v2635_v19 }
0x10f0   :  { %v2720_v43 = vpop.eup %2719 }
0x10f1   :  { %v1902_v44 = vsel %vm145_vm2, %v2720_v43, 0.0 }
0x10f2   :  { %1903 = vadd.xlane.f32.xlu1 %v1902_v44 }
0x10f6   :  { %2066 = vadd.xlane.f32.xlu1 %v2065_v11 }
0x1120   :  { %v1812_v46 = vpop.f32.mrb[26].mxu0 }
0x1121   :  { %v1816_v47 = vadd.f32 %v1812_v46, %v1574_v15  ;;  %v2565_v48 = vpop.f32.mrb[27].mxu0 }
0x117f   :  { %v1904_v49 = vpop.xlane.xlu1 %1903 }
0x1180   :  { %2721 = vrcp.f32 %v1904_v49  ;;  %v46_v49 = vld [vmem:[%s3147_s2 + $0x90] sm:$0xff] }
0x1183   :  { %v2067_v54 = vpop.xlane.xlu1 %2066 }
0x1184   :  { %v2072_v55 = vmul.f32 0.03125, %v2067_v54 }
0x1186   :  { %v2074_v58 = vsub.f32 %v2063_v45, %v2072_v55 }
0x1188   :  { %v2076_v62 = vmul.f32 %v2074_v58, %v2074_v58 }
0x118a   :  { %v2722_v50 = vpop.eup %2721  ;;  %v2078_v63 = vsel %vm60_vm0, %v2076_v62, 0.0 }
0x118b   :  { %v1906_v51 = vmul.f32 %v2722_v50, %v2720_v43  ;;  %v47_v50 = vld [vmem:[%s3147_s2 + $0x98] sm:$0xff] }
0x118d   :  { %2574 = vmatmul.mubr.msk.f32.vlgmr.msra.gmra.mrb[28].mxu0 %vm145_vm2, %v1906_v51  ;;  %v2671_v51 = vpack.c.bf16 %v47_v50, %v46_v49 }
0x118e   :  { %2638 = vmatpush3.bf16.msra.mxu0 %v2635_v19 }
0x118f   :  { %2640 = vmatprep.subr.bf16.mxu0 %v2639_v21 }
0x1192   :  { %2642 = vmatpush3.bf16.msra.mxu0 %v2639_v21 }
0x1260   :  { %v1979_v52 = vpop.f32.mrb[28].mxu0 }
0x1261   :  { %v2575_v53 = vpop.f32.mrb[29].mxu0  ;;  %2579 = vmatmul.mubr.msk.f32.vlgmr.msra.gmra.mrb[18].mxu1 %vm145_vm2, %v1979_v52  ;;  %v2366_v52 = vld [vmem:[%s3148_s3 + $0x2] ss:$0 sm:$0xff] }
0x1262   :  { %2646 = vmatpush3.bf16.msra.mxu1 %v2643_v25 }
0x1263   :  { %2648 = vmatprep.subr.bf16.mxu1 %v2647_v27 }
0x1266   :  { %2650 = vmatpush3.bf16.msra.mxu1 %v2647_v27 }
0x1267   :  { %2652 = vmatprep.subr.bf16.mxu1 %v2651_v31 }
0x126a   :  { %2654 = vmatpush3.bf16.msra.mxu1 %v2651_v31 }
0x126b   :  { %2656 = vmatprep.subr.bf16.mxu1 %v2655_v35 }
0x126e   :  { %2658 = vmatpush3.bf16.msra.mxu1 %v2655_v35 }
0x126f   :  { %2660 = vmatprep.subr.bf16.mxu1 %v2659_v38 }
0x1272   :  { %2662 = vmatpush3.bf16.msra.mxu1 %v2659_v38 }
0x1273   :  { %2664 = vmatprep.subr.bf16.mxu1 %v2663_v40 }
0x1276   :  { %2666 = vmatpush3.bf16.msra.mxu1 %v2663_v40 }
0x1334   :  { %v2052_v5 = vpop.f32.mrb[18].mxu1 }
0x1335   :  { %v2056_v56 = vadd.f32 %v2052_v5, %v1816_v47  ;;  %v2580_v57 = vpop.f32.mrb[19].mxu1 }
0x1337   :  { %v2062_v59 = vadd.f32 %v2363_v42, %v2056_v56  ;;  %v45_v42 = vld [vmem:[%s3147_s2 + $0x88] sm:$0xff] }
0x1338   :  { %v2667_v8 = vpack.c.bf16 %v45_v42, %v44_v41 }
0x1339   :  { %v2064_v60 = vadd.f32 %v2062_v59, %v2818_v7 }
0x133a   :  { %2668 = vmatprep.subr.bf16.mxu1 %v2667_v8 }
0x133b   :  { %v2068_v61 = vsel %vm60_vm0, %v2064_v60, 0.0  ;;  %2670 = vmatpush3.bf16.msra.mxu1 %v2667_v8 }
0x133c   :  { %2069 = vadd.xlane.f32.xlu1 %v2068_v61  ;;  %2672 = vmatprep.subr.bf16.mxu1 %v2671_v51 }
0x133f   :  { %2674 = vmatpush3.bf16.msra.mxu1 %v2671_v51 }
0x1340   :  { %2079 = vadd.xlane.f32.xlu1 %v2078_v63 }
0x13c9   :  { %v2070_v0 = vpop.xlane.xlu1 %2069 }
0x13ca   :  { %v2073_v1 = vmul.f32 0.03125, %v2070_v0 }
0x13cc   :  { %v3037_v3 = vsub.f32 %v2064_v60, %v2073_v1 }
0x13cd   :  { %v2080_v4 = vpop.xlane.xlu1 %2079 }
0x13ce   :  { %v2084_v6 = vmul.f32 0.03125, %v2080_v4  ;;  %v2077_v9 = vmul.f32 %v3037_v3, %v3037_v3 }
0x13d0   :  { %v2086_v10 = vadd.f32 1e-05, %v2084_v6  ;;  %v2081_v30 = vsel %vm60_vm0, %v2077_v9, 0.0 }
0x13d1   :  { %2082 = vadd.xlane.f32.xlu1 %v2081_v30 }
0x13d2   :  { %2723 = vrsqrt.f32 %v2086_v10 }
0x13dc   :  { %v2724_v7 = vpop.eup %2723 }
0x13dd   :  { %v2090_v13 = vmul.f32 %v2724_v7, %v2074_v58  ;;  %v2369_v58 = vld [vmem:[%s3148_s3 + $0x3] ss:$0 sm:$0xff] }
0x13df   :  { %v2096_v15 = vmul.f32 %v2364_v12, %v2090_v13 }
0x13e1   :  { %v3048_v16 = vadd.f32 %v2365_v14, %v2096_v15 }
0x13e3   :  { %2589 = vmatprep.mubr.msk.f32.mxu0 %vm60_vm0, %v3048_v16 }
0x145e   :  { %v2083_v43 = vpop.xlane.xlu1 %2082 }
0x145f   :  { %v2085_v44 = vmul.f32 0.03125, %v2083_v43 }
0x1461   :  { %v2087_v45 = vadd.f32 1e-05, %v2085_v44 }
0x1463   :  { %2725 = vrsqrt.f32 %v2087_v45 }
0x146d   :  { %v2726_v11 = vpop.eup %2725 }
0x146e   :  { %v2091_v46 = vmul.f32 %v2726_v11, %v3037_v3 }
0x1470   :  { %v2097_v47 = vmul.f32 %v2364_v12, %v2091_v46 }
0x1472   :  { %v2103_v48 = vadd.f32 %v2365_v14, %v2097_v47 }
0x1474   :  { %2590 = vmatmul.mubr.msk.f32.vlgmr.msra.gmra.mrb[30].mxu0 %vm60_vm0, %v2103_v48 }
0x1547   :  { %v2591_v53 = vpop.f32.mrb[30].mxu0 }
0x1548   :  { %v2186_v54 = vadd.f32 %v2591_v53, %v2366_v52  ;;  %v2180_v55 = vpop.f32.mrb[31].mxu0 }
0x1549   :  { %v2181_v5 = vadd.f32 %v2366_v52, %v2180_v55 }
0x154a   :  { %v2190_v57 = vmax.f32 %v2186_v54, 0.0 }
0x154b   :  { %v2189_v56 = vmax.f32 %v2181_v5, 0.0 }
0x154d   :  { %2624 = vmatprep.mubr.f32.mxu1 %v2189_v56 }
0x154e   :  { %2625 = vmatmul.mubr.f32.vlgmr.msra.gmra.mrb[20].mxu1 %v2190_v57 }
0x1621   :  { %v2626_v59 = vpop.f32.mrb[20].mxu1 }
0x1622   :  { %v2267_v60 = vadd.f32 %v2626_v59, %v2369_v58  ;;  %v2261_v61 = vpop.f32.mrb[21].mxu1 }
0x1623   :  { %v2262_v62 = vadd.f32 %v2369_v58, %v2261_v61 }
0x1624   :  { %v2271_v63 = vadd.f32 %v2267_v60, %v2103_v48 }
0x1625   :  { %v2270_v0 = vadd.f32 %v2262_v62, %v3048_v16 }
0x1626   :  { %v2275_v1 = vsel %vm60_vm0, %v2271_v63, 0.0 }
0x1627   :  { %2276 = vadd.xlane.f32.xlu1 %v2275_v1  ;;  %v2272_v3 = vsel %vm60_vm0, %v2270_v0, 0.0 }
0x1628   :  { %2273 = vadd.xlane.f32.xlu0 %v2272_v3 }
0x16b4   :  { %v2277_v4 = vpop.xlane.xlu1 %2276 }
0x16b5   :  { %v2279_v6 = vmul.f32 0.03125, %v2277_v4  ;;  %v2274_v9 = vpop.xlane.xlu0 %2273 }
0x16b6   :  { %v2278_v10 = vmul.f32 0.03125, %v2274_v9 }
0x16b7   :  { %v2281_v30 = vsub.f32 %v2271_v63, %v2279_v6 }
0x16b8   :  { %v2280_v7 = vsub.f32 %v2270_v0, %v2278_v10 }
0x16b9   :  { %v2283_v14 = vmul.f32 %v2281_v30, %v2281_v30 }
0x16ba   :  { %v2282_v12 = vmul.f32 %v2280_v7, %v2280_v7 }
0x16bb   :  { %v2287_v15 = vsel %vm60_vm0, %v2283_v14, 0.0 }
0x16bc   :  { %v2284_v13 = vsel %vm60_vm0, %v2282_v12, 0.0 }
0x16bd   :  { %2285 = vadd.xlane.f32.xlu1 %v2284_v13 }
0x16c1   :  { %2288 = vadd.xlane.f32.xlu1 %v2287_v15 }
0x174a   :  { %v2286_v16 = vpop.xlane.xlu1 %2285 }
0x174b   :  { %v2290_v17 = vmul.f32 0.03125, %v2286_v16 }
0x174d   :  { %v2292_v18 = vadd.f32 1e-05, %v2290_v17 }
0x174e   :  { %v2289_v19 = vpop.xlane.xlu1 %2288 }
0x174f   :  { %2727 = vrsqrt.f32 %v2292_v18  ;;  %v2291_v20 = vmul.f32 0.03125, %v2289_v19 }
0x1751   :  { %v2293_v2 = vadd.f32 1e-05, %v2291_v20 }
0x1753   :  { %2729 = vrsqrt.f32 %v2293_v2 }
0x1759   :  { %v2728_v21 = vpop.eup %2727 }
0x175a   :  { %v2296_v23 = vmul.f32 %v2728_v21, %v2280_v7 }
0x175c   :  { %v2302_v25 = vmul.f32 %v2370_v22, %v2296_v23 }
0x175d   :  { %v2730_v26 = vpop.eup %2729 }
0x175e   :  { %v2297_v27 = vmul.f32 %v2730_v26, %v2281_v30  ;;  %v2308_v28 = vadd.f32 %v2371_v24, %v2302_v25 }
0x1760   :  { %v2303_v29 = vmul.f32 %v2370_v22, %v2297_v27  ;;  %2310 = vst.msk [vmem:[#allocation2] sm:$0xff] %vm60_vm0, %v2308_v28 }
0x1762   :  { %v2309_v31 = vadd.f32 %v2371_v24, %v2303_v29 }
0x1764   :  { %2311 = vst.msk [vmem:[#allocation2 + $0x8] sm:$0xff] %vm60_vm0, %v2309_v31 }
0x1765   :  { %2742 = shalt.err (!%p2739_p4)
}
0x1766   :  { %s2743_s22 = scalar_lea.hbm %s3149_s4, 256 }
0x1767   :  { %p2744_p5 = scmp.ne.s32.totalorder %s3149_s4, %s2743_s22  ;;  %p2747_p6 = scmp.lt.u32.totalorder %s2743_s22, %s3149_s4 }
0x1769   :  { %p2749_p7 = pnand %p2747_p6, %p2744_p5 }
0x176b   :  { %2752 = shalt.err (!%p2749_p7)
}
0x176c   :  { %s2769_s27 = smov 128   ;;  %s2770_s28 = smov 8  }
0x176d   :  { %2323 = dma.vmem_to_hbm [thread:$0]  %s2318_s19, 256, %s3149_s4, [#allocation3], %s2769_s27, %s2769_s27, %s2770_s28  }
0x176e   :  { %2753 = dma.done.wait [#allocation3], 256  }
0x176f   :  { %2754 = vsyncadd [#allocation3], 4294967040 }
0x1770   :  { %2327 = vsyncpa [#allocation3], 1 }

</bundles_post_ra>
